<compile_context>
chip_gen: v5e
topology: v5e:2x2
jax: 0.10.0
libtpu: 0.0.40
codegen_flags: <defaults>
</compile_context>

<pallas_src>
import functools

import jax
import jax.numpy as jnp
from jax import lax
from jax.experimental import pallas as pl
from jax.experimental.pallas import tpu as pltpu

COEFF_BCE = 20.0
LANE = 128
MAX_TILE_R = 2048   # 2048 x 128 f32 = 1 MiB per input block (x2 inputs x2 bufs = 4 MiB)
GRID_CORES = 2      # leading "parallel" axis: both TensorCores on v7x, serial elsewhere


def _sublane_multiple(dtype):
    """Minimum sublane multiple for a dtype (packing-aware): 8 / 16 / 32."""
    itemsize = jnp.dtype(dtype).itemsize
    if itemsize >= 4:
        return 8
    return 8 * (4 // itemsize)


def _wbce_kernel(pred_ref, tgt_ref, out_ref, *, tile_r, sub_r, steps_per_core,
                 total_blocks, grid_blocks, first_masked_block, total):
    core = pl.program_id(0)
    step = pl.program_id(1)
    blk = core * steps_per_core + step          # global block index of this step

    # Output block (1, 4, 8, 128) is resident across the inner "arbitrary" axis
    # and acts as this core's accumulator.
    @pl.when(step == 0)
    def _init():
        out_ref[...] = jnp.zeros_like(out_ref)

    def accumulate(masked):
        def body(g, carry):
            p_cnt, n_cnt, s_pos, s_neg = carry
            r0 = pl.multiple_of(g * sub_r, sub_r)
            x = pred_ref[pl.ds(r0, sub_r), :].astype(jnp.float32)
            t = tgt_ref[pl.ds(r0, sub_r), :].astype(jnp.float32)
            if masked:
                # Only the single block holding the end of the real data takes
                # this path.  Both x and t are forced to safe values BEFORE the
                # bce expression, so zero padding and garbage VMEM past the
                # array end can never inject NaN/Inf (0 * NaN == NaN).
                row = (blk * tile_r + r0
                       + lax.broadcasted_iota(jnp.int32, (sub_r, LANE), 0))
                col = lax.broadcasted_iota(jnp.int32, (sub_r, LANE), 1)
                full_rows = total // LANE
                valid = (row < full_rows) | ((row == full_rows)
                                             & (col < (total % LANE)))
                x = jnp.where(valid, x, 0.0)
                t = jnp.where(valid, t, -1.0)    # neither pos nor neg
            pos = (t == 1.0).astype(jnp.float32)
            neg = (t == 0.0).astype(jnp.float32)
            # torch's numerically stable BCE-with-logits:
            #   l = max(x, 0) - x*t + log(1 + exp(-|x|))
            bce = jnp.maximum(x, 0.0) - x * t + jnp.log1p(jnp.exp(-jnp.abs(x)))

            def fold(v):        # (sub_r, 128) -> (8, 128); VALU-only, no XLU
                if sub_r == 8:
                    return v
                return jnp.sum(v.reshape(sub_r // 8, 8, LANE), axis=0)

            return (p_cnt + fold(pos),
                    n_cnt + fold(neg),
                    s_pos + fold(pos * bce),
                    s_neg + fold(neg * bce))

        z = jnp.zeros((8, LANE), jnp.float32)
        p_cnt, n_cnt, s_pos, s_neg = lax.fori_loop(
            0, tile_r // sub_r, body, (z, z, z, z))
        # Single RMW of the resident output block per grid step.
        out_ref[0, 0] += p_cnt
        out_ref[0, 1] += n_cnt
        out_ref[0, 2] += s_pos
        out_ref[0, 3] += s_neg

    # Static facts about which branches can occur at all.
    has_masked = first_masked_block < total_blocks   # one block ends mid-data
    has_oob = grid_blocks > total_blocks              # round-up steps with no data

    if not has_masked and not has_oob:
        accumulate(masked=False)
    else:
        if first_masked_block > 0:
            @pl.when(blk < first_masked_block)
            def _full_blocks():
                accumulate(masked=False)

        if has_masked:
            @pl.when((blk >= first_masked_block) & (blk < total_blocks))
            def _tail_block():
                accumulate(masked=True)
        # Steps with blk >= total_blocks carry no data: skipped entirely
        # (their DMA is clamped to the last valid block by the index map).


def boundary_loss(bd_pre, bd_gt, coeff_bce=COEFF_BCE, max_tile_rows=MAX_TILE_R):
    n, c, h, w = bd_pre.shape
    total = n * c * h * w

    # torch pairs bd_pre.permute(0,2,3,1).flatten() with bd_gt.flatten().
    # For the boundary head (C == 1) the permute is an identity reorder, so the
    # reshape is free; for C > 1 keep torch's exact pairing (one copy).
    pred = (bd_pre if c == 1 else jnp.transpose(bd_pre, (0, 2, 3, 1))).reshape(-1)
    tgt = bd_gt.reshape(-1)

    # dtype-aware sublane multiple shared by both inputs.
    chunk = max(_sublane_multiple(pred.dtype), _sublane_multiple(tgt.dtype))
    min_block = chunk * LANE
    padded_total = -(-total // min_block) * min_block
    if padded_total != total:
        pad = padded_total - total
        pred = jnp.pad(pred, (0, pad))
        tgt = jnp.pad(tgt, (0, pad))          # pad lives in the masked tail block
    rows = padded_total // LANE               # multiple of `chunk`

    # Rows per grid step: as big as VMEM comfortably allows, but no bigger than
    # one core's share so both TensorCores get work on v7x.
    per_core = -(-rows // GRID_CORES)
    tile_r = min(max_tile_rows, -(-per_core // chunk) * chunk)
    tile_r = max(chunk, (tile_r // chunk) * chunk)
    # Sub-tile processed per inner-loop iteration (register-resident work).
    sub_r = next(s for s in (4 * chunk, 2 * chunk, chunk) if tile_r % s == 0)

    total_blocks = -(-rows // tile_r)
    steps_per_core = -(-total_blocks // GRID_CORES)
    grid_blocks = GRID_CORES * steps_per_core
    first_masked_block = total // (tile_r * LANE)

    kernel = functools.partial(
        _wbce_kernel, tile_r=tile_r, sub_r=sub_r, steps_per_core=steps_per_core,
        total_blocks=total_blocks, grid_blocks=grid_blocks,
        first_masked_block=first_masked_block, total=total)

    def in_map(ci, si):
        # Clamp so the round-up steps never issue an out-of-bounds DMA; the
        # kernel skips accumulation for those steps anyway.
        return (jnp.minimum(ci * steps_per_core + si, total_blocks - 1), 0)

    partials = pl.pallas_call(
        kernel,
        out_shape=jax.ShapeDtypeStruct((GRID_CORES, 4, 8, LANE), jnp.float32),
        grid_spec=pltpu.PrefetchScalarGridSpec(
            num_scalar_prefetch=0,
            grid=(GRID_CORES, steps_per_core),
            in_specs=[
                pl.BlockSpec((tile_r, LANE), in_map),
                pl.BlockSpec((tile_r, LANE), in_map),
            ],
            out_specs=pl.BlockSpec((1, 4, 8, LANE), lambda ci, si: (ci, 0, 0, 0)),
        ),
        compiler_params=pltpu.CompilerParams(
            dimension_semantics=("parallel", "arbitrary")),
    )(pred.reshape(rows, LANE), tgt.reshape(rows, LANE))

    # Tiny (2,4,8,128) reduction + weighted combine in plain JAX.
    sums = jnp.sum(partials, axis=(0, 2, 3))
    pos_num, neg_num, s_pos, s_neg = sums[0], sums[1], sums[2], sums[3]
    sum_num = pos_num + neg_num   # NaN weights if no 0/1 targets (matches torch)

    w_pos = neg_num / sum_num     # weight applied where target == 1
    w_neg = pos_num / sum_num     # weight applied where target == 0

    mean_loss = (w_pos * s_pos + w_neg * s_neg) / jnp.float32(total)
    return jnp.float32(coeff_bce) * mean_loss


def _reference_boundary_loss(bd_pre, bd_gt, coeff_bce=COEFF_BCE):
    # Pure-JAX mirror of the PyTorch weighted_bce for a correctness check.
    x = jnp.transpose(bd_pre, (0, 2, 3, 1)).reshape(-1).astype(jnp.float32)
    t = bd_gt.reshape(-1).astype(jnp.float32)
    pos = (t == 1.0)
    neg = (t == 0.0)
    pos_num = jnp.sum(pos.astype(jnp.float32))
    neg_num = jnp.sum(neg.astype(jnp.float32))
    sum_num = pos_num + neg_num
    weight = jnp.where(pos, neg_num / sum_num,
                       jnp.where(neg, pos_num / sum_num, 0.0))
    bce = jnp.maximum(x, 0.0) - x * t + jnp.log1p(jnp.exp(-jnp.abs(x)))
    return coeff_bce * jnp.mean(weight * bce)


if __name__ == "__main__":
    key = jax.random.PRNGKey(0)

    # Small shapes consistent with the module (boundary head usually C == 1).
    # Each case exercises a different tiling / masking / dtype path.
    cases = [
        ((2, 1, 16, 16), jnp.float32, MAX_TILE_R),   # single padded tile, fmb=0
        ((1, 1, 33, 37), jnp.float32, MAX_TILE_R),   # ragged tail -> masked block
        ((1, 1, 160, 160), jnp.float32, 64),         # partial last block, 2x2 grid
        ((2, 1, 256, 256), jnp.float32, MAX_TILE_R), # exact split, fully unmasked
        ((1, 1, 64, 48), jnp.bfloat16, MAX_TILE_R),  # bf16 logits (16-sublane path)
        ((2, 4, 16, 16), jnp.float32, MAX_TILE_R),   # C > 1 -> permute path
    ]
    for idx, (shape, pdtype, tile_rows) in enumerate(cases):
        k1, k2 = jax.random.split(jax.random.fold_in(key, idx))
        bd_pre = jax.random.normal(k1, shape, dtype=jnp.float32).astype(pdtype)
        bd_gt = jax.random.bernoulli(k2, p=0.3, shape=shape).astype(jnp.float32)

        loss = boundary_loss(bd_pre, bd_gt, max_tile_rows=tile_rows)
        loss = jax.block_until_ready(loss)

        ref = _reference_boundary_loss(bd_pre, bd_gt)
        assert jnp.allclose(loss, ref, rtol=2e-5, atol=2e-6), (shape, loss, ref)

    print("KERNEL_OK")
</pallas_src>

<mosaic_0001>
module attributes {stable_mosaic.version = 11 : i64} {
  func.func @_wbce_kernel(%arg0: i32, %arg1: i32, %arg2: memref<8x128xf32, #tpu.memory_space<vmem>>, %arg3: memref<8x128xf32, #tpu.memory_space<vmem>>, %arg4: memref<1x4x8x128xf32, #tpu.memory_space<vmem>>) attributes {dimension_semantics = [#tpu.dimension_semantics<parallel>, #tpu.dimension_semantics<arbitrary>], iteration_bounds = array<i64: 2, 1>, scalar_prefetch = 0 : i64, scratch_operands = 0 : i64, tpu.core_type = #tpu.core_type<tc>, window_params = [{transform_indices = @transform_0, window_bounds = array<i64: 8, 128>}, {transform_indices = @transform_1, window_bounds = array<i64: 8, 128>}, {transform_indices = @transform_2, window_bounds = array<i64: 1, 4, 8, 128>}]} {
    %c1_i32 = arith.constant 1 : i32
    %0 = arith.muli %arg0, %c1_i32 : i32
    %1 = arith.addi %0, %arg1 : i32
    %c0_i32 = arith.constant 0 : i32
    %2 = arith.cmpi eq, %arg1, %c0_i32 : i32
    %3 = arith.extui %2 : i1 to i32
    %c0_i32_0 = arith.constant 0 : i32
    %4 = arith.cmpi ne, %3, %c0_i32_0 : i32
    scf.if %4 {
      %cst = arith.constant 0.000000e+00 : f32
      %10 = vector.broadcast %cst : f32 to vector<1x4x8x128xf32>
      %c0 = arith.constant 0 : index
      %c0_4 = arith.constant 0 : index
      %c0_5 = arith.constant 0 : index
      %c0_6 = arith.constant 0 : index
      %11 = vector.load %arg4[%c0, %c0_4, %c0_5, %c0_6] : memref<1x4x8x128xf32, #tpu.memory_space<vmem>>, vector<1x4x8x128xf32>
      tpu.vector_store %arg4[%c0, %c0_4, %c0_5, %c0_6], %10 {strides = array<i32>} : memref<1x4x8x128xf32, #tpu.memory_space<vmem>>, vector<1x4x8x128xf32>,
    } else {
    }
    %c0_i32_1 = arith.constant 0 : i32
    %5 = arith.cmpi sge, %1, %c0_i32_1 : i32
    %c1_i32_2 = arith.constant 1 : i32
    %6 = arith.cmpi slt, %1, %c1_i32_2 : i32
    %7 = arith.andi %5, %6 : i1
    %8 = arith.extui %7 : i1 to i32
    %c0_i32_3 = arith.constant 0 : i32
    %9 = arith.cmpi ne, %8, %c0_i32_3 : i32
    scf.if %9 {
      %cst = arith.constant 0.000000e+00 : f32
      %10 = vector.broadcast %cst : f32 to vector<8x128xf32>
      %c0_i32_4 = arith.constant 0 : i32
      %c8_i32 = arith.constant 8 : i32
      %11 = arith.muli %c0_i32_4, %c8_i32 : i32
      %12 = tpu.assume_multiple %11, 8 : i32
      %13 = arith.index_cast %12 : i32 to index
      %c0 = arith.constant 0 : index
      %14 = vector.load %arg2[%13, %c0] : memref<8x128xf32, #tpu.memory_space<vmem>>, vector<8x128xf32>
      %15 = arith.index_cast %12 : i32 to index
      %c0_5 = arith.constant 0 : index
      %16 = vector.load %arg3[%15, %c0_5] : memref<8x128xf32, #tpu.memory_space<vmem>>, vector<8x128xf32>
      %c8_i32_6 = arith.constant 8 : i32
      %17 = arith.muli %1, %c8_i32_6 : i32
      %18 = arith.addi %17, %12 : i32
      %19 = tpu.iota {dimensions = array<i32: 0>} : vector<8x128xi32>
      %20 = vector.broadcast %18 : i32 to vector<8x128xi32>
      %21 = arith.addi %20, %19 : vector<8x128xi32>
      %22 = tpu.iota {dimensions = array<i32: 1>} : vector<8x128xi32>
      %c4_i32 = arith.constant 4 : i32
      %23 = vector.broadcast %c4_i32 : i32 to vector<8x128xi32>
      %24 = arith.cmpi slt, %21, %23 : vector<8x128xi32>
      %c4_i32_7 = arith.constant 4 : i32
      %25 = vector.broadcast %c4_i32_7 : i32 to vector<8x128xi32>
      %26 = arith.cmpi eq, %21, %25 : vector<8x128xi32>
      %c0_i32_8 = arith.constant 0 : i32
      %27 = vector.broadcast %c0_i32_8 : i32 to vector<8x128xi32>
      %28 = arith.cmpi slt, %22, %27 : vector<8x128xi32>
      %29 = arith.andi %26, %28 : vector<8x128xi1>
      %30 = arith.ori %24, %29 : vector<8x128xi1>
      %cst_9 = arith.constant 0.000000e+00 : f32
      %31 = vector.broadcast %cst_9 : f32 to vector<8x128xf32>
      %32 = arith.select %30, %14, %31 : vector<8x128xi1>, vector<8x128xf32>
      %cst_10 = arith.constant -1.000000e+00 : f32
      %33 = vector.broadcast %cst_10 : f32 to vector<8x128xf32>
      %34 = arith.select %30, %16, %33 : vector<8x128xi1>, vector<8x128xf32>
      %cst_11 = arith.constant 1.000000e+00 : f32
      %35 = vector.broadcast %cst_11 : f32 to vector<8x128xf32>
      %36 = arith.cmpf oeq, %34, %35 : vector<8x128xf32>
      %37 = arith.extui %36 : vector<8x128xi1> to vector<8x128xi32>
      %38 = arith.sitofp %37 : vector<8x128xi32> to vector<8x128xf32>
      %cst_12 = arith.constant 0.000000e+00 : f32
      %39 = vector.broadcast %cst_12 : f32 to vector<8x128xf32>
      %40 = arith.cmpf oeq, %34, %39 : vector<8x128xf32>
      %41 = arith.extui %40 : vector<8x128xi1> to vector<8x128xi32>
      %42 = arith.sitofp %41 : vector<8x128xi32> to vector<8x128xf32>
      %cst_13 = arith.constant 0.000000e+00 : f32
      %43 = vector.broadcast %cst_13 : f32 to vector<8x128xf32>
      %44 = arith.maximumf %32, %43 : vector<8x128xf32>
      %45 = arith.mulf %32, %34 : vector<8x128xf32>
      %46 = arith.subf %44, %45 : vector<8x128xf32>
      %47 = math.absf %32 : vector<8x128xf32>
      %cst_14 = arith.constant 0.000000e+00 : f32
      %48 = vector.broadcast %cst_14 : f32 to vector<8x128xf32>
      %49 = arith.subf %48, %47 : vector<8x128xf32>
      %50 = math.exp %49 : vector<8x128xf32>
      %51 = math.log1p %50 : vector<8x128xf32>
      %52 = arith.addf %46, %51 : vector<8x128xf32>
      %53 = arith.addf %10, %38 : vector<8x128xf32>
      %54 = arith.addf %10, %42 : vector<8x128xf32>
      %55 = arith.mulf %38, %52 : vector<8x128xf32>
      %56 = arith.addf %10, %55 : vector<8x128xf32>
      %57 = arith.mulf %42, %52 : vector<8x128xf32>
      %58 = arith.addf %10, %57 : vector<8x128xf32>
      %c1_i32_15 = arith.constant 1 : i32
      %c0_16 = arith.constant 0 : index
      %c0_17 = arith.constant 0 : index
      %c0_18 = arith.constant 0 : index
      %c0_19 = arith.constant 0 : index
      %59 = vector.load %arg4[%c0_16, %c0_17, %c0_18, %c0_19] : memref<1x4x8x128xf32, #tpu.memory_space<vmem>>, vector<1x1x8x128xf32>
      %60 = vector.shape_cast %59 : vector<1x1x8x128xf32> to vector<8x128xf32>
      %61 = arith.addf %60, %53 : vector<8x128xf32>
      %c0_20 = arith.constant 0 : index
      %c0_21 = arith.constant 0 : index
      %c0_22 = arith.constant 0 : index
      %c0_23 = arith.constant 0 : index
      %62 = vector.load %arg4[%c0_20, %c0_21, %c0_22, %c0_23] : memref<1x4x8x128xf32, #tpu.memory_space<vmem>>, vector<1x1x8x128xf32>
      %63 = vector.shape_cast %62 : vector<1x1x8x128xf32> to vector<8x128xf32>
      %64 = vector.shape_cast %61 : vector<8x128xf32> to vector<1x1x8x128xf32>
      tpu.vector_store %arg4[%c0_20, %c0_21, %c0_22, %c0_23], %64 {strides = array<i32>} : memref<1x4x8x128xf32, #tpu.memory_space<vmem>>, vector<1x1x8x128xf32>,
      %c0_24 = arith.constant 0 : index
      %c1 = arith.constant 1 : index
      %c0_25 = arith.constant 0 : index
      %c0_26 = arith.constant 0 : index
      %65 = vector.load %arg4[%c0_24, %c1, %c0_25, %c0_26] : memref<1x4x8x128xf32, #tpu.memory_space<vmem>>, vector<1x1x8x128xf32>
      %66 = vector.shape_cast %65 : vector<1x1x8x128xf32> to vector<8x128xf32>
      %67 = arith.addf %66, %54 : vector<8x128xf32>
      %c0_27 = arith.constant 0 : index
      %c1_28 = arith.constant 1 : index
      %c0_29 = arith.constant 0 : index
      %c0_30 = arith.constant 0 : index
      %68 = vector.load %arg4[%c0_27, %c1_28, %c0_29, %c0_30] : memref<1x4x8x128xf32, #tpu.memory_space<vmem>>, vector<1x1x8x128xf32>
      %69 = vector.shape_cast %68 : vector<1x1x8x128xf32> to vector<8x128xf32>
      %70 = vector.shape_cast %67 : vector<8x128xf32> to vector<1x1x8x128xf32>
      tpu.vector_store %arg4[%c0_27, %c1_28, %c0_29, %c0_30], %70 {strides = array<i32>} : memref<1x4x8x128xf32, #tpu.memory_space<vmem>>, vector<1x1x8x128xf32>,
      %c0_31 = arith.constant 0 : index
      %c2 = arith.constant 2 : index
      %c0_32 = arith.constant 0 : index
      %c0_33 = arith.constant 0 : index
      %71 = vector.load %arg4[%c0_31, %c2, %c0_32, %c0_33] : memref<1x4x8x128xf32, #tpu.memory_space<vmem>>, vector<1x1x8x128xf32>
      %72 = vector.shape_cast %71 : vector<1x1x8x128xf32> to vector<8x128xf32>
      %73 = arith.addf %72, %56 : vector<8x128xf32>
      %c0_34 = arith.constant 0 : index
      %c2_35 = arith.constant 2 : index
      %c0_36 = arith.constant 0 : index
      %c0_37 = arith.constant 0 : index
      %74 = vector.load %arg4[%c0_34, %c2_35, %c0_36, %c0_37] : memref<1x4x8x128xf32, #tpu.memory_space<vmem>>, vector<1x1x8x128xf32>
      %75 = vector.shape_cast %74 : vector<1x1x8x128xf32> to vector<8x128xf32>
      %76 = vector.shape_cast %73 : vector<8x128xf32> to vector<1x1x8x128xf32>
      tpu.vector_store %arg4[%c0_34, %c2_35, %c0_36, %c0_37], %76 {strides = array<i32>} : memref<1x4x8x128xf32, #tpu.memory_space<vmem>>, vector<1x1x8x128xf32>,
      %c0_38 = arith.constant 0 : index
      %c3 = arith.constant 3 : index
      %c0_39 = arith.constant 0 : index
      %c0_40 = arith.constant 0 : index
      %77 = vector.load %arg4[%c0_38, %c3, %c0_39, %c0_40] : memref<1x4x8x128xf32, #tpu.memory_space<vmem>>, vector<1x1x8x128xf32>
      %78 = vector.shape_cast %77 : vector<1x1x8x128xf32> to vector<8x128xf32>
      %79 = arith.addf %78, %58 : vector<8x128xf32>
      %c0_41 = arith.constant 0 : index
      %c3_42 = arith.constant 3 : index
      %c0_43 = arith.constant 0 : index
      %c0_44 = arith.constant 0 : index
      %80 = vector.load %arg4[%c0_41, %c3_42, %c0_43, %c0_44] : memref<1x4x8x128xf32, #tpu.memory_space<vmem>>, vector<1x1x8x128xf32>
      %81 = vector.shape_cast %80 : vector<1x1x8x128xf32> to vector<8x128xf32>
      %82 = vector.shape_cast %79 : vector<8x128xf32> to vector<1x1x8x128xf32>
      tpu.vector_store %arg4[%c0_41, %c3_42, %c0_43, %c0_44], %82 {strides = array<i32>} : memref<1x4x8x128xf32, #tpu.memory_space<vmem>>, vector<1x1x8x128xf32>,
    } else {
    }
    return
  }
  func.func @transform_0(%arg0: i32, %arg1: i32) -> (i32, i32) {
    %c1_i32 = arith.constant 1 : i32
    %0 = arith.muli %arg0, %c1_i32 : i32
    %1 = arith.addi %0, %arg1 : i32
    %c0_i32 = arith.constant 0 : i32
    %2 = arith.minsi %1, %c0_i32 : i32
    %c0_i32_0 = arith.constant 0 : i32
    %c0_i32_1 = arith.constant 0 : i32
    return %2, %c0_i32_0 : i32, i32
  }
  func.func @transform_1(%arg0: i32, %arg1: i32) -> (i32, i32) {
    %c1_i32 = arith.constant 1 : i32
    %0 = arith.muli %arg0, %c1_i32 : i32
    %1 = arith.addi %0, %arg1 : i32
    %c0_i32 = arith.constant 0 : i32
    %2 = arith.minsi %1, %c0_i32 : i32
    %c0_i32_0 = arith.constant 0 : i32
    %c0_i32_1 = arith.constant 0 : i32
    return %2, %c0_i32_0 : i32, i32
  }
  func.func @transform_2(%arg0: i32, %arg1: i32) -> (i32, i32, i32, i32) {
    %c0_i32 = arith.constant 0 : i32
    %c0_i32_0 = arith.constant 0 : i32
    %c0_i32_1 = arith.constant 0 : i32
    %c0_i32_2 = arith.constant 0 : i32
    return %arg0, %c0_i32, %c0_i32_0, %c0_i32_1 : i32, i32, i32, i32
  }
}

</mosaic_0001>

<bundles_post_ra>
// kernel: tpu_custom_call.1
= control target key start
LH: loop header
LB: loop body
LE: loop exit
PB: predicated region body
PF: predicated region fallthrough
CT: control target
= control target key end

     0   :  { %7 = vsyncpa [#allocation3], 0  ;;  %s938_s0 = inlined_call_operand.hbm [shape: f32[8,128], index: 0, kind: input, shape index: {}]   ;;  %s939_s1 = inlined_call_operand.hbm [shape: f32[8,128], index: 1, kind: input, shape index: {}]   ;;  %s940_s2 = inlined_call_operand.hbm [shape: f32[2,4,8,128], index: 2, kind: output, shape index: {}]  }
   0x1   :  { %9 = vsyncpa [#allocation3 + $0x1], 0 }
   0x2   :  { %10 = vsyncpa [#allocation6], 0 }
   0x3   :  { %12 = vsyncpa [#allocation6 + $0x1], 0 }
   0x4   :  { %13 = vsyncpa [#allocation4], 0 }
   0x5   :  { %15 = vsyncpa [#allocation4 + $0x1], 0  ;;  %s748_s9 = smov 0   ;;  %s750_s10 = smov 0  }
   0x6   :  { %s752_s11 = smov 0   ;;  %s754_s12 = smov 0  }
   0x7   :  { %s756_s13 = smov 0   ;;  %s758_s14 = smov 0  }
   0x8   :  { %s760_s15 = smov 0   ;;  %s762_s16 = smov 0  }
   0x9 LB: > { %s432_s17 = sadd.s32 4294967295, %s725_s16   ;;  %s433_s18 = sadd.s32 4294967294, %s725_s16   ;;  %s725_s16 = sphi %s762_s16, %s21_s16   ;;  %s721_s15 = sphi %s760_s15, %s952_s15   ;;  %s717_s14 = sphi %s758_s14, %s951_s14   ;;  %s713_s13 = sphi %s756_s13, %s928_s13   ;;  %s709_s12 = sphi %s754_s12, %s950_s12   ;;  %s705_s11 = sphi %s752_s11, %s949_s11   ;;  %s701_s10 = sphi %s750_s10, %s948_s10   ;;  %s697_s9 = sphi %s748_s9, %s947_s9  }
   0xa   : > { %s33_s19 = sadd.s32 1, %s721_s15  ;;  %p694_p1 = scmp.ne.s32.totalorder %s713_s13, 0 }
   0xb   : > { %p35_p0 = scmp.ge.s32.totalorder %s33_s19, 2  ;;  %p54_p2 = scmp.eq.s32.totalorder %s725_s16, 0 }
   0xc   : > { %p59_p3 = scmp.ne.s32.totalorder %s713_s13, %s709_s12  ;;  %p60_p5 = scmp.eq.s32.totalorder %s432_s17, 0 }
   0xd   : > { %s954_s19 = smov (%p35_p0, %s33_s19), 0  ;;  %p794_p4 = por %p694_p1, %p54_p2 }
   0xe   : > { %p798_p6 = por %p60_p5, %p59_p3  ;;  %s101_s22 = ssub.s32 %s721_s15, %s954_s19 }
   0xf   : > { %p102_p7 = scmp.eq.s32.totalorder %s101_s22, 0  ;;  %s104_s23 = sadd.s32 1, %s705_s11 }
  0x10   : > { %p114_p8 = scmp.ne.s32.totalorder %s705_s11, %s701_s10  ;;  %p115_p9 = scmp.eq.s32.totalorder %s432_s17, 1 }
  0x11   : > { %s806_s24 = scalar_select %p102_p7, %s705_s11, %s104_s23  }
  0x12   : > { %p120_p10 = scmp.ne.s32.totalorder %s701_s10, %s697_s9  ;;  %p121_p11 = scmp.eq.s32.totalorder %s433_s18, 1 }
  0x13   : > { %p812_p12 = por %p115_p9, %p114_p8  ;;  %p435_p13 = scmp.ge.s32.totalorder %s725_s16, 2 }
  0x14   : > { %p817_p0 = por %p121_p11, %p120_p10  ;;  %p476_p1 = scmp.lt.s32.totalorder %s725_s16, 2 }
  0x15   : > { %s154_s29 = sshll.u32 %s938_s0, 4  ;;  %s727_s30 = smov [#allocation2]   ;;  %s155_s29 = int_to_ptr.hbm [resolvable:$true] %s154_s29 }
  0x16   : > { %s156_s3 = sshll.u32 %s727_s30, 4  ;;  %p827_p2 = pnand %p476_p1, %p794_p4  ;;  %s157_s3 = int_to_ptr.vmem [resolvable:$true] %s156_s3 }
  0x17   : > { %p440_p3 = scmp.ge.s32.totalorder %s725_s16, 1  ;;  %p183_p5 = scmp.lt.s32.totalorder %s725_s16, 3 }
  0x18   : > { %s558_s5 = sshra.s32 %s155_s29, 4  ;;  %p562_p8 = pneg %p827_p2  ;;  %s559_s5 = int_to_ptr.hbm [resolvable:$true] %s558_s5 }
  0x19   : > { %s560_s6 = scalar_lea.hbm %s559_s5, 8  ;;  %s565_s12 = scalar_lea.hbm %s938_s0, 8 }
  0x1a   : > { %p561_p7 = scmp.ne.s32.totalorder %s559_s5, %s560_s6  ;;  %p567_p4 = scmp.lt.s32.totalorder %s565_s12, %s560_s6 }
  0x1c   : > { %p563_p9 = pnand %p562_p8, %p561_p7 }
  0x1e   : > { %p564_p10 = pneg %p563_p9 }
  0x20   : > { %p569_p11 = pnand %p567_p4, %p564_p10 }
  0x22   : > { %572 = shalt.err (!%p569_p11)
}
  0x23   : > { %468 = dma.hbm_to_vmem [thread:$0]  (!%p827_p2), %s155_s29, 128, %s157_s3, [#allocation3]  }
  0x24   : > { %p847_p1 = pnand %p440_p3, %p183_p5  ;;  %s176_s22 = sshll.u32 %s939_s1, 4  ;;  %s177_s22 = int_to_ptr.hbm [resolvable:$true] %s176_s22 }
  0x25   : > { %s728_s23 = smov [#allocation5]   ;;  %s588_s28 = sshra.s32 %s177_s22, 4  ;;  %s589_s28 = int_to_ptr.hbm [resolvable:$true] %s588_s28 }
  0x26   : > { %s178_s27 = sshll.u32 %s728_s23, 4  ;;  %s590_s30 = scalar_lea.hbm %s589_s28, 8  ;;  %s179_s27 = int_to_ptr.vmem [resolvable:$true] %s178_s27 }
  0x27   : > { %p591_p7 = scmp.ne.s32.totalorder %s589_s28, %s590_s30  ;;  %s595_s5 = scalar_lea.hbm %s939_s1, 8 }
  0x28   : > { %p597_p3 = scmp.lt.s32.totalorder %s595_s5, %s590_s30 }
  0x29   : > { %p593_p9 = pnand %p591_p7, %p562_p8 }
  0x2b   : > { %p594_p10 = pneg %p593_p9 }
  0x2d   : > { %p599_p5 = pnand %p597_p3, %p594_p10 }
  0x2f   : > { %602 = shalt.err (!%p599_p5)
}
  0x30   : > { %471 = dma.hbm_to_vmem [thread:$0]  (!%p827_p2), %s177_s22, 128, %s179_s27, [#allocation6]  }
  0x31   : > { %187 = sbr.rel (%p847_p1) target bundleno = 124 (0x7c), region = 28  ;;  %s189_s6 = sand.u32 (!%p847_p1), 1, %s713_s13  }
  0x32   : > { %s441_s7 = sshll.u32 (!%p847_p1), %s189_s6, 3  ;;  %s190_s8 = scalar_lea.sflag (!%p847_p1), [#allocation3], %s189_s6 }
  0x33   : > { %s193_s12 = scalar_lea.vmem (!%p847_p1), [#allocation2], %s441_s7 }
  0x36   : > { %683 = dma.done.wait (%p798_p6), %s190_s8, 128  }
  0x37   : > { %685 = vsyncadd (%p798_p6), %s190_s8, 4294967168  ;;  %s200_s18 = scalar_lea.sflag [#allocation6], %s189_s6  ;;  %s203_s20 = scalar_lea.vmem [#allocation5], %s441_s7 }
  0x38   : > { %687 = dma.done.wait (%p798_p6), %s200_s18, 128  }
  0x39   : > { %689 = vsyncadd (%p798_p6), %s200_s18, 4294967168  ;;  %s227_s4 = sand.u32 1, %s701_s10   ;;  %p245_p2 = scmp.ge.s32.totalorder %s717_s14, 0  ;;  %v729_v0 = vmov 0.0  }
  0x3a   : > { %s443_s17 = sshll.u32 %s227_s4, 5  ;;  %p246_p8 = scmp.lt.s32.totalorder %s717_s14, 1 }
  0x3b   : > { %s878_s22 = scalar_lea.vmem [#allocation7], %s443_s17 }
  0x3c   : > { %241 = vst [vmem:[%s878_s22] sm:$0xff] %v729_v0  ;;  %p247_p4 = pnand %p246_p8, %p245_p2 }
  0x3d   : > { %242 = vst [vmem:[%s878_s22 + $0x8] sm:$0xff] %v729_v0  ;;  %s444_s21 = sshll.u32 (!%p247_p4), %s717_s14, 3 }
  0x3e   : > { %243 = vst [vmem:[%s878_s22 + $0x10] sm:$0xff] %v729_v0  ;;  %250 = sbr.rel (%p247_p4) target bundleno = 108 (0x6c), region = 44 }
  0x3f   : > { %244 = vst [vmem:[%s878_s22 + $0x18] sm:$0xff] %v729_v0 }
  0x43   : > { %v255_v1 = vlaneseq  ;;  %v257_v2 = vstv %s444_s21  ;;  %v251_v4 = vld [vmem:[%s193_s12] sm:$0xff]  ;;  %v252_v5 = vld [vmem:[%s203_s20] sm:$0xff]  ;;  %v730_v12 = vmov 0.0  }
  0x44   : > { %v297_v9 = vld [vmem:[%s878_s22] sm:$0xff]  ;;  %v447_v10 = vld [vmem:[%s878_s22 + $0x8] sm:$0xff] }
  0x45   : > { %v256_v3 = vshrl.u32 %v255_v1, 7  ;;  %v449_v32 = vld [vmem:[%s878_s22 + $0x10] sm:$0xff] }
  0x46   : > { %v451_v33 = vld [vmem:[%s878_s22 + $0x18] sm:$0xff] }
  0x47   : > { %v258_v6 = vadd.s32 %v257_v2, %v256_v3 }
  0x49   : > { %vm261_vm0 = vcmp.lt.s32.totalorder %v258_v6, 4 }
  0x4a   : > { %v266_v7 = vsel %vm261_vm0, %v251_v4, 0.0  ;;  %v267_v8 = vsel %vm261_vm0, %v252_v5, -1.0 }
  0x4b   : > { %vm268_vm1 = vcmp.eq.f32.partialorder %v267_v8, 1.0  ;;  %v277_v11 = vand.u32 2147483647, %v266_v7  ;;  %vm271_vm2 = vcmp.eq.f32.partialorder %v267_v8, 0.0  ;;  %v275_v23 = vmul.f32 %v267_v8, %v266_v7 }
  0x4c   : > { %v445_v13 = vsel %vm268_vm1, 1.0, %v730_v12  ;;  %v446_v14 = vsel %vm271_vm2, 1.0, %v730_v12  ;;  %v274_v24 = vmax.f32 %v266_v7, 0.0 }
  0x4d   : > { %v278_v15 = vsub.f32 0.0, %v277_v11  ;;  %v298_v16 = vadd.f32 %v445_v13, %v297_v9  ;;  %v302_v17 = vadd.f32 %v447_v10, %v446_v14 }
  0x4e   : > { %v276_v28 = vsub.f32 %v274_v24, %v275_v23 }
  0x4f   : > { %v279_v18 = vmul.f32 1.442695, %v278_v15  ;;  %299 = vst [vmem:[%s878_s22] sm:$0xff] %v298_v16 }
  0x50   : > { %448 = vst [vmem:[%s878_s22 + $0x8] sm:$0xff] %v302_v17 }
  0x51   : > { %554 = vpow2.f32 %v279_v18 }
  0x57   : > { %v555_v19 = vpop.eup %554 }
  0x58   : > { %v281_v20 = vadd.f32 1.0, %v555_v19  ;;  %v284_v21 = vmul.f32 -0.5, %v555_v19  ;;  %v287_v25 = vand.u32 2147483647, %v555_v19 }
  0x5a   : > { %556 = vlog2.f32 %v281_v20  ;;  %v285_v22 = vadd.f32 1.0, %v284_v21  ;;  %vm288_vm3 = vcmp.lt.f32.partialorder %v287_v25, 0.0004427343 }
  0x5c   : > { %v286_v26 = vmul.f32 %v555_v19, %v285_v22 }
  0x60   : > { %v557_v27 = vpop.eup %556 }
  0x61   : > { %v283_v29 = vmul.f32 0.6931472, %v557_v27 }
  0x63   : > { %v289_v30 = vsel %vm288_vm3, %v286_v26, %v283_v29 }
  0x64   : > { %v290_v31 = vadd.f32 %v289_v30, %v276_v28 }
  0x66   : > { %v293_v34 = vmul.f32 %v445_v13, %v290_v31  ;;  %v295_v35 = vmul.f32 %v446_v14, %v290_v31 }
  0x68   : > { %v306_v36 = vadd.f32 %v449_v32, %v293_v34  ;;  %v310_v37 = vadd.f32 %v451_v33, %v295_v35 }
  0x6a   : > { %450 = vst [vmem:[%s878_s22 + $0x10] sm:$0xff] %v306_v36 }
  0x6b   : > { %452 = vst [vmem:[%s878_s22 + $0x18] sm:$0xff] %v310_v37 }
  0x6c PF: > { %s458_s23 = sshll.u32 %s717_s14, 5  ;;  %s325_s29 = sshll.u32 %s878_s22, 4  ;;  %s326_s29 = int_to_ptr.vmem [resolvable:$true] %s325_s29 }
  0x6d   : > { %s324_s30 = scalar_lea.hbm %s940_s2, %s458_s23  ;;  %s313_s5 = scalar_lea.sflag [#allocation4], %s227_s4 }
  0x6e   : > { %s327_s3 = sshll.u32 %s324_s30, 4  ;;  %s638_s14 = scalar_lea.hbm %s940_s2, 64  ;;  %s328_s3 = int_to_ptr.hbm [resolvable:$true] %s327_s3 }
  0x6f   : > { %s632_s6 = sshra.s32 %s328_s3, 4  ;;  %s633_s6 = int_to_ptr.hbm [resolvable:$true] %s632_s6 }
  0x70   : > { %s634_s7 = scalar_lea.hbm %s633_s6, 32  ;;  %p639_p7 = scmp.lt.s32.totalorder %s633_s6, %s940_s2 }
  0x71   : > { %p635_p6 = scmp.ne.s32.totalorder %s633_s6, %s634_s7  ;;  %p640_p9 = scmp.lt.s32.totalorder %s638_s14, %s634_s7 }
  0x73   : > { %p636_p11 = pnand %p635_p6, %p812_p12  ;;  %p641_p10 = por %p640_p9, %p639_p7 }
  0x75   : > { %p637_p1 = pneg %p636_p11 }
  0x77   : > { %p642_p3 = pnand %p641_p10, %p637_p1 }
  0x79   : > { %645 = shalt.err (!%p642_p3)
}
  0x7a   : > { %s731_s4 = smov 128   ;;  %s732_s17 = smov 8  }
  0x7b   : > { %463 = dma.vmem_to_hbm [thread:$0]  (%p812_p12), %s326_s29, 512, %s328_s3, %s313_s5, %s731_s4, %s731_s4, %s732_s17  }
  0x7c PF: > { %s342_s22 = sand.u32 1, %s697_s9   ;;  %p473_p5 = pnand %p435_p13, %p817_p0 }
  0x7d   : > { %s343_s21 = scalar_lea.sflag [#allocation4], %s342_s22 }
  0x7e   : > { %p474_p2 = pneg %p473_p5 }
  0x80   : > { %691 = dma.done.wait (%p474_p2), %s343_s21, 512  }
  0x81   : > { %693 = vsyncadd (%p474_p2), %s343_s21, 4294966784  ;;  %s21_s16 = sadd.s32 1, %s725_s16   ;;  %s947_s9 = smov %s701_s10 }
  0x82   : > { %p18_p8 = scmp.ge.s32.totalorder %s21_s16, 4   ;;  %s948_s10 = smov %s705_s11 }
  0x83   : > { %s949_s11 = smov %s806_s24  ;;  %s950_s12 = smov %s713_s13 }
  0x84   : > { %s928_s13 = smov 0   ;;  %s951_s14 = smov %s721_s15 }
  0x85   : > { %s952_s15 = smov %s954_s19  ;;  %20 = sbr.rel (!%p18_p8) target bundleno = 9 (0x9), region = 97 }
  0x8a   :  { %349 = vsyncpa [#allocation3], 1 }
  0x8b   :  { %351 = vsyncpa [#allocation3 + $0x1], 1 }
  0x8c   :  { %352 = vsyncpa [#allocation6], 1 }
  0x8d   :  { %354 = vsyncpa [#allocation6 + $0x1], 1 }
  0x8e   :  { %355 = vsyncpa [#allocation4], 1 }
  0x8f   :  { %357 = vsyncpa [#allocation4 + $0x1], 1 }

</bundles_post_ra>
